<compile_context>
chip_gen: v5e
topology: v5e:2x2
jax: 0.10.0
libtpu: 0.0.40
codegen_flags: <defaults>
</compile_context>

<pallas_src>
import functools

import jax
import jax.numpy as jnp
from jax.experimental import pallas as pl
from jax.experimental.pallas import tpu as pltpu


# ---------------------------------------------------------------------------
# small helpers
# ---------------------------------------------------------------------------

def _round_up(a, b):
    return ((a + b - 1) // b) * b


def _vmem_capacity_bytes():
    """Best-effort per-core VMEM capacity; conservative (v7x) fallback."""
    try:
        info = pltpu.get_tpu_info()
        for name in ("vmem_capacity_bytes", "vmem_bytes", "vmem_size_bytes"):
            v = getattr(info, name, None)
            if v:
                return int(v)
    except Exception:
        pass
    return 64 << 20


def _chunked_lane_sum(xf, hw):
    """Sum a (C, hw) f32 tile over the lane axis -> (C, 1).

    Accumulates 128-lane-wide chunks with plain VPU adds (bounded unroll) and
    performs a single small cross-lane (XLU) reduction at the end, so the
    reduction never becomes XLU-slot bound relative to HBM streaming.
    """
    if hw <= 256:
        return jnp.sum(xf, axis=-1, keepdims=True)
    n128 = hw // 128
    group = 1
    while (n128 + group - 1) // group > 64:   # bound the unroll
        group *= 2
    width = 128 * group
    n = hw // width
    if n < 2:
        return jnp.sum(xf, axis=-1, keepdims=True)
    part = xf[:, 0:width]
    for j in range(1, n):
        part = part + xf[:, j * width:(j + 1) * width]
    out = jnp.sum(part, axis=-1, keepdims=True)
    rem = hw - n * width
    if rem:
        out = out + jnp.sum(xf[:, n * width:hw], axis=-1, keepdims=True)
    return out


def _excitation(mean_f32, wd_ref, bd_ref, wu_ref, bu_ref):
    """Tiny SE MLP on VPU/EUP (kept off the MXU). mean (C,1) f32 -> gate (C,1) f32."""
    wd = wd_ref[...].astype(jnp.float32)                         # (C, Cint)
    bd = bd_ref[...].astype(jnp.float32)                         # (1, Cint)
    wu = wu_ref[...].astype(jnp.float32)                         # (C, Cint)
    bu = bu_ref[...].astype(jnp.float32)                         # (C, 1)
    h = jnp.sum(mean_f32 * wd, axis=0, keepdims=True) + bd       # (1, Cint)
    h = jnp.maximum(h, 0.0)
    s = jnp.sum(h * wu, axis=1, keepdims=True) + bu              # (C, 1)
    return jax.nn.sigmoid(s)


# ---------------------------------------------------------------------------
# kernels
# ---------------------------------------------------------------------------

def se_fused_kernel(x_ref, wd_ref, bd_ref, wu_ref, bu_ref, o_ref, *, inv_hw, hw):
    """One pass per batch: pool + MLP + scale. x block is the whole (1,C,HW) slab."""
    x = x_ref[0]                                                  # (C, HW)
    mean = _chunked_lane_sum(x.astype(jnp.float32), hw) * inv_hw  # (C, 1)
    gate = _excitation(mean, wd_ref, bd_ref, wu_ref, bu_ref)      # (C, 1) f32
    o_ref[0] = (x * gate.astype(x.dtype)).astype(o_ref.dtype)


def se_pool_gate_spatial_kernel(x_ref, wd_ref, bd_ref, wu_ref, bu_ref, gate_ref,
                                sum_ref, *, inv_hw, tile_hw):
    """Spatially-tiled pooling: accumulate (C,128) lane-wise partial sums on the
    VPU; on the last tile do one small XLU reduce + the excitation MLP."""
    t = pl.program_id(1)

    @pl.when(t == 0)
    def _():
        sum_ref[...] = jnp.zeros_like(sum_ref)

    xf = x_ref[0].astype(jnp.float32)                             # (C, T)
    part = xf[:, 0:128]
    for j in range(1, tile_hw // 128):                            # pure VPU adds
        part = part + xf[:, j * 128:(j + 1) * 128]
    sum_ref[...] += part                                          # (C, 128)

    @pl.when(t == pl.num_programs(1) - 1)
    def _():
        mean = jnp.sum(sum_ref[...], axis=-1, keepdims=True) * inv_hw   # (C, 1)
        gate = _excitation(mean, wd_ref, bd_ref, wu_ref, bu_ref)
        gate_ref[0] = gate.astype(gate_ref.dtype)


def se_pool_gate_ctile_kernel(x_ref, wd_ref, bd_ref, wu_ref, bu_ref, gate_ref,
                              mean_ref, *, inv_hw, hw, c_full):
    """Channel-tiled pooling (HW not 128-divisible): each step reduces its own
    (Ct, HW) slice; the last step assembles the full mean and emits the gate."""
    ct = pl.program_id(1)
    xf = x_ref[0].astype(jnp.float32)                             # (Ct, HW)
    mean_ref[ct] = _chunked_lane_sum(xf, hw) * inv_hw             # (Ct, 1)

    @pl.when(ct == pl.num_programs(1) - 1)
    def _():
        mean = mean_ref[...].reshape(c_full, 1)                   # (C, 1)
        gate = _excitation(mean, wd_ref, bd_ref, wu_ref, bu_ref)
        gate_ref[0] = gate.astype(gate_ref.dtype)


def se_scale_kernel(gate_ref, x_ref, o_ref):
    """out = x * gate (gate already in x.dtype, broadcast over the lane axis)."""
    o_ref[0] = (x_ref[0] * gate_ref[0]).astype(o_ref.dtype)


# ---------------------------------------------------------------------------
# tile pickers
# ---------------------------------------------------------------------------

def _pick_tile_hw(hw, c_pad, itemsize, budget_bytes, max_lanes=8192):
    """Largest 128-multiple divisor of hw within a per-tile VMEM budget."""
    k = hw // 128
    max_d = budget_bytes // max(c_pad * 128 * itemsize, 1)
    max_d = max(1, min(k, max_d, max_lanes // 128))
    d = max_d
    while k % d != 0:
        d -= 1
    return 128 * d


def _pick_tile_c(c, hw_pad, itemsize, budget_bytes):
    """Largest sublane-aligned channel tile dividing C within the budget."""
    sub = 16 if itemsize == 2 else 8
    if c % sub != 0 or c <= sub:
        return c
    max_ct = budget_bytes // max(hw_pad * itemsize, 1)
    ct = min(c, max(sub, (max_ct // sub) * sub))
    while c % ct != 0:
        ct -= sub
    return max(ct, sub)


# ---------------------------------------------------------------------------
# dispatch paths
# ---------------------------------------------------------------------------

def _se_fused(x, wd_t, bd, wu, bu, *, N, C, HW, Cint, inv_hw, itemsize,
              vmem_limit_bytes, donate_input):
    cost = pl.CostEstimate(
        flops=2 * N * C * HW + 4 * N * C * Cint,
        transcendentals=N * C,
        bytes_accessed=2 * N * C * HW * itemsize)
    return pl.pallas_call(
        functools.partial(se_fused_kernel, inv_hw=inv_hw, hw=HW),
        out_shape=jax.ShapeDtypeStruct((N, C, HW), x.dtype),
        grid_spec=pltpu.PrefetchScalarGridSpec(
            num_scalar_prefetch=0,
            grid=(N,),
            in_specs=[
                pl.BlockSpec((1, C, HW), lambda n: (n, 0, 0)),   # x slab
                pl.BlockSpec((C, Cint), lambda n: (0, 0)),       # W_down^T
                pl.BlockSpec((1, Cint), lambda n: (0, 0)),       # b_down
                pl.BlockSpec((C, Cint), lambda n: (0, 0)),       # W_up
                pl.BlockSpec((C, 1), lambda n: (0, 0)),          # b_up
            ],
            out_specs=pl.BlockSpec((1, C, HW), lambda n: (n, 0, 0)),
        ),
        compiler_params=pltpu.CompilerParams(
            dimension_semantics=("parallel",),
            vmem_limit_bytes=vmem_limit_bytes),
        cost_estimate=cost,
        input_output_aliases=({0: 0} if donate_input else {}),
    )(x, wd_t, bd, wu, bu)


def _se_two_pass_spatial(x, wd_t, bd, wu, bu, *, N, C, HW, Cint, inv_hw, itemsize,
                         c_pad, tile_hw, tile_budget, vmem_limit_bytes, donate_input):
    T = tile_hw if tile_hw is not None else _pick_tile_hw(HW, c_pad, itemsize, tile_budget)
    assert HW % T == 0 and T % 128 == 0, "spatial tile must be a 128-multiple divisor of H*W"
    n_tiles = HW // T

    gate = pl.pallas_call(
        functools.partial(se_pool_gate_spatial_kernel, inv_hw=inv_hw, tile_hw=T),
        out_shape=jax.ShapeDtypeStruct((N, C, 1), x.dtype),
        grid_spec=pltpu.PrefetchScalarGridSpec(
            num_scalar_prefetch=0,
            grid=(N, n_tiles),
            in_specs=[
                pl.BlockSpec((1, C, T), lambda n, t: (n, 0, t)),
                pl.BlockSpec((C, Cint), lambda n, t: (0, 0)),
                pl.BlockSpec((1, Cint), lambda n, t: (0, 0)),
                pl.BlockSpec((C, Cint), lambda n, t: (0, 0)),
                pl.BlockSpec((C, 1), lambda n, t: (0, 0)),
            ],
            out_specs=pl.BlockSpec((1, C, 1), lambda n, t: (n, 0, 0)),
            scratch_shapes=[pltpu.VMEM((C, 128), jnp.float32)],
        ),
        compiler_params=pltpu.CompilerParams(
            dimension_semantics=("parallel", "arbitrary"),
            vmem_limit_bytes=vmem_limit_bytes),
        cost_estimate=pl.CostEstimate(
            flops=N * C * HW, transcendentals=N * C,
            bytes_accessed=N * C * HW * itemsize),
    )(x, wd_t, bd, wu, bu)

    out = pl.pallas_call(
        se_scale_kernel,
        out_shape=jax.ShapeDtypeStruct((N, C, HW), x.dtype),
        grid_spec=pltpu.PrefetchScalarGridSpec(
            num_scalar_prefetch=0,
            grid=(N, n_tiles),
            in_specs=[
                pl.BlockSpec((1, C, 1), lambda n, t: (n, 0, 0)),
                pl.BlockSpec((1, C, T), lambda n, t: (n, 0, t)),
            ],
            out_specs=pl.BlockSpec((1, C, T), lambda n, t: (n, 0, t)),
        ),
        compiler_params=pltpu.CompilerParams(
            dimension_semantics=("parallel", "parallel"),
            vmem_limit_bytes=vmem_limit_bytes),
        cost_estimate=pl.CostEstimate(
            flops=N * C * HW, transcendentals=0,
            bytes_accessed=2 * N * C * HW * itemsize),
        input_output_aliases=({1: 0} if donate_input else {}),
    )(gate, x)
    return out


def _se_two_pass_ctile(x, wd_t, bd, wu, bu, *, N, C, HW, Cint, inv_hw, itemsize,
                       hw_pad, c_tile, tile_budget, vmem_limit_bytes, donate_input):
    Ct = c_tile if c_tile is not None else _pick_tile_c(C, hw_pad, itemsize, tile_budget)
    assert C % Ct == 0, "channel tile must divide C"
    n_ct = C // Ct

    gate = pl.pallas_call(
        functools.partial(se_pool_gate_ctile_kernel, inv_hw=inv_hw, hw=HW, c_full=C),
        out_shape=jax.ShapeDtypeStruct((N, C, 1), x.dtype),
        grid_spec=pltpu.PrefetchScalarGridSpec(
            num_scalar_prefetch=0,
            grid=(N, n_ct),
            in_specs=[
                pl.BlockSpec((1, Ct, HW), lambda n, c: (n, c, 0)),
                pl.BlockSpec((C, Cint), lambda n, c: (0, 0)),
                pl.BlockSpec((1, Cint), lambda n, c: (0, 0)),
                pl.BlockSpec((C, Cint), lambda n, c: (0, 0)),
                pl.BlockSpec((C, 1), lambda n, c: (0, 0)),
            ],
            out_specs=pl.BlockSpec((1, C, 1), lambda n, c: (n, 0, 0)),
            scratch_shapes=[pltpu.VMEM((n_ct, Ct, 1), jnp.float32)],
        ),
        compiler_params=pltpu.CompilerParams(
            dimension_semantics=("parallel", "arbitrary"),
            vmem_limit_bytes=vmem_limit_bytes),
        cost_estimate=pl.CostEstimate(
            flops=N * C * HW, transcendentals=N * C,
            bytes_accessed=N * C * HW * itemsize),
    )(x, wd_t, bd, wu, bu)

    out = pl.pallas_call(
        se_scale_kernel,
        out_shape=jax.ShapeDtypeStruct((N, C, HW), x.dtype),
        grid_spec=pltpu.PrefetchScalarGridSpec(
            num_scalar_prefetch=0,
            grid=(N, n_ct),
            in_specs=[
                pl.BlockSpec((1, Ct, 1), lambda n, c: (n, c, 0)),
                pl.BlockSpec((1, Ct, HW), lambda n, c: (n, c, 0)),
            ],
            out_specs=pl.BlockSpec((1, Ct, HW), lambda n, c: (n, c, 0)),
        ),
        compiler_params=pltpu.CompilerParams(
            dimension_semantics=("parallel", "parallel"),
            vmem_limit_bytes=vmem_limit_bytes),
        cost_estimate=pl.CostEstimate(
            flops=N * C * HW, transcendentals=0,
            bytes_accessed=2 * N * C * HW * itemsize),
        input_output_aliases=({1: 0} if donate_input else {}),
    )(gate, x)
    return out


# ---------------------------------------------------------------------------
# public wrapper
# ---------------------------------------------------------------------------

def se_block(x_nchw, wd_t, bd, wu, bu, *,
             max_fused_slab_bytes=None, tile_hw=None, c_tile=None,
             vmem_limit_bytes=None, donate_input=False):
    """x_nchw: (N, C, H, W). Returns (N, C, H, W). Matches PyTorch SEBlock.forward."""
    N, C, H, W = x_nchw.shape
    HW = H * W
    Cint = wd_t.shape[1]
    itemsize = x_nchw.dtype.itemsize
    inv_hw = 1.0 / float(HW)                     # compile-time constant

    # Free reshape (no data movement): NCHW -> (N, C, HW), HW on the lane axis.
    x = x_nchw.reshape(N, C, HW)

    cap = _vmem_capacity_bytes()
    if vmem_limit_bytes is None:
        # <= ~48 MiB on 64-MiB parts (v7x); up to ~96 MiB on 128-MiB parts (v5e/v6e).
        vmem_limit_bytes = min((cap * 3) // 4, 96 << 20)

    sub = 16 if itemsize == 2 else 8
    c_pad = _round_up(C, sub)
    hw_pad = _round_up(HW, 128)
    slab_bytes = c_pad * hw_pad * itemsize
    if max_fused_slab_bytes is None:
        # 2x(in) + 2x(out) double-buffered slabs + headroom must fit.
        max_fused_slab_bytes = max(vmem_limit_bytes // 5, 1 << 20)

    if slab_bytes <= max_fused_slab_bytes and tile_hw is None and c_tile is None:
        out = _se_fused(x, wd_t, bd, wu, bu, N=N, C=C, HW=HW, Cint=Cint,
                        inv_hw=inv_hw, itemsize=itemsize,
                        vmem_limit_bytes=vmem_limit_bytes,
                        donate_input=donate_input)
        return out.reshape(N, C, H, W)

    # Two-pass fallback for slabs that don't fit VMEM.
    tile_budget = (4 << 20) if cap <= (64 << 20) else (8 << 20)
    if HW % 128 == 0 and c_tile is None:
        out = _se_two_pass_spatial(x, wd_t, bd, wu, bu, N=N, C=C, HW=HW, Cint=Cint,
                                   inv_hw=inv_hw, itemsize=itemsize, c_pad=c_pad,
                                   tile_hw=tile_hw, tile_budget=tile_budget,
                                   vmem_limit_bytes=vmem_limit_bytes,
                                   donate_input=donate_input)
    else:
        out = _se_two_pass_ctile(x, wd_t, bd, wu, bu, N=N, C=C, HW=HW, Cint=Cint,
                                 inv_hw=inv_hw, itemsize=itemsize, hw_pad=hw_pad,
                                 c_tile=c_tile, tile_budget=tile_budget,
                                 vmem_limit_bytes=vmem_limit_bytes,
                                 donate_input=donate_input)
    return out.reshape(N, C, H, W)


# ---------------------------------------------------------------------------
# reference + test
# ---------------------------------------------------------------------------

def reference_se_block(x, wd_t, bd, wu, bu):
    """Pure-JAX reference mirroring PyTorch SEBlock.forward (NCHW)."""
    pooled = jnp.mean(x, axis=(2, 3))                       # (N, C)
    h = jnp.maximum(pooled @ wd_t + bd[0], 0.0)             # (N, Cint)
    s = jax.nn.sigmoid(h @ wu.T + bu[:, 0])                 # (N, C)
    return x * s[:, :, None, None]


def _make_inputs(key, N, C, H, W, Cint, dtype=jnp.float32):
    kx, kwd, kbd, kwu, kbu = jax.random.split(key, 5)
    x = jax.random.normal(kx, (N, C, H, W), dtype=dtype)
    wd_t = 0.3 * jax.random.normal(kwd, (C, Cint), dtype=jnp.float32)
    bd = 0.1 * jax.random.normal(kbd, (1, Cint), dtype=jnp.float32)
    wu = 0.3 * jax.random.normal(kwu, (C, Cint), dtype=jnp.float32)
    bu = 0.1 * jax.random.normal(kbu, (C, 1), dtype=jnp.float32)
    return x, wd_t, bd, wu, bu


if __name__ == "__main__":
    key = jax.random.PRNGKey(0)
    k1, k2, k3 = jax.random.split(key, 3)

    # Case 1: spec shapes (N=2, C=4, 16x16) -> fused single-pass path.
    x, wd_t, bd, wu, bu = _make_inputs(k1, 2, 4, 16, 16, 2)
    ref = reference_se_block(x, wd_t, bd, wu, bu)
    out_fused = jax.block_until_ready(se_block(x, wd_t, bd, wu, bu))
    assert out_fused.shape == x.shape
    assert jnp.allclose(out_fused, ref, atol=1e-5, rtol=1e-5)

    # Case 2: force the spatially-tiled two-pass path (exercises the (C,128)
    # lane-wise accumulator across grid steps).
    out_spatial = jax.block_until_ready(
        se_block(x, wd_t, bd, wu, bu, max_fused_slab_bytes=0, tile_hw=128))
    assert jnp.allclose(out_spatial, ref, atol=1e-5, rtol=1e-5)

    # Case 3: non-128-divisible HW (14x14) -> channel-tiled two-pass path.
    x3, wd3, bd3, wu3, bu3 = _make_inputs(k2, 2, 16, 14, 14, 4)
    ref3 = reference_se_block(x3, wd3, bd3, wu3, bu3)
    out_ctile = jax.block_until_ready(
        se_block(x3, wd3, bd3, wu3, bu3, max_fused_slab_bytes=0, c_tile=8))
    assert out_ctile.shape == x3.shape
    assert jnp.allclose(out_ctile, ref3, atol=1e-5, rtol=1e-5)

    # Case 4: fused path with a multi-vreg lane axis (32x32) -> chunked VPU sum.
    x4, wd4, bd4, wu4, bu4 = _make_inputs(k3, 1, 8, 32, 32, 2)
    ref4 = reference_se_block(x4, wd4, bd4, wu4, bu4)
    out4 = jax.block_until_ready(se_block(x4, wd4, bd4, wu4, bu4))
    assert jnp.allclose(out4, ref4, atol=1e-5, rtol=1e-5)

    print("KERNEL_OK")
</pallas_src>

<mosaic_0001>
module attributes {stable_mosaic.version = 11 : i64} {
  func.func @se_fused_kernel(%arg0: i32, %arg1: memref<1x4x256xf32, #tpu.memory_space<vmem>>, %arg2: memref<4x2xf32, #tpu.memory_space<vmem>>, %arg3: memref<1x2xf32, #tpu.memory_space<vmem>>, %arg4: memref<4x2xf32, #tpu.memory_space<vmem>>, %arg5: memref<4x1xf32, #tpu.memory_space<vmem>>, %arg6: memref<1x4x256xf32, #tpu.memory_space<vmem>>) attributes {dimension_semantics = [#tpu.dimension_semantics<parallel>], iteration_bounds = array<i64: 2>, scalar_prefetch = 0 : i64, scratch_operands = 0 : i64, tpu.core_type = #tpu.core_type<tc>, window_params = [{transform_indices = @transform_0, window_bounds = array<i64: 1, 4, 256>}, {pipeline_mode = #tpu.pipeline_mode<synchronous>, transform_indices = @transform_1, window_bounds = array<i64: 4, 2>}, {pipeline_mode = #tpu.pipeline_mode<synchronous>, transform_indices = @transform_2, window_bounds = array<i64: 1, 2>}, {pipeline_mode = #tpu.pipeline_mode<synchronous>, transform_indices = @transform_3, window_bounds = array<i64: 4, 2>}, {pipeline_mode = #tpu.pipeline_mode<synchronous>, transform_indices = @transform_4, window_bounds = array<i64: 4, 1>}, {transform_indices = @transform_5, window_bounds = array<i64: 1, 4, 256>}]} {
    %c0 = arith.constant 0 : index
    %c0_0 = arith.constant 0 : index
    %c0_1 = arith.constant 0 : index
    %0 = vector.load %arg1[%c0, %c0_0, %c0_1] : memref<1x4x256xf32, #tpu.memory_space<vmem>>, vector<1x4x256xf32>
    %1 = vector.shape_cast %0 : vector<1x4x256xf32> to vector<4x256xf32>
    %cst = arith.constant dense<0.000000e+00> : vector<4xf32>
    %2 = vector.multi_reduction <add>, %1, %cst [1] : vector<4x256xf32> to vector<4xf32>
    %3 = vector.shape_cast %2 : vector<4xf32> to vector<4x1xf32>
    %cst_2 = arith.constant 3.906250e-03 : f32
    %4 = vector.broadcast %cst_2 : f32 to vector<4x1xf32>
    %5 = arith.mulf %3, %4 : vector<4x1xf32>
    %c0_3 = arith.constant 0 : index
    %c0_4 = arith.constant 0 : index
    %6 = vector.load %arg2[%c0_3, %c0_4] : memref<4x2xf32, #tpu.memory_space<vmem>>, vector<4x2xf32>
    %c0_5 = arith.constant 0 : index
    %c0_6 = arith.constant 0 : index
    %7 = vector.load %arg3[%c0_5, %c0_6] : memref<1x2xf32, #tpu.memory_space<vmem>>, vector<1x2xf32>
    %c0_7 = arith.constant 0 : index
    %c0_8 = arith.constant 0 : index
    %8 = vector.load %arg4[%c0_7, %c0_8] : memref<4x2xf32, #tpu.memory_space<vmem>>, vector<4x2xf32>
    %c0_9 = arith.constant 0 : index
    %c0_10 = arith.constant 0 : index
    %9 = vector.load %arg5[%c0_9, %c0_10] : memref<4x1xf32, #tpu.memory_space<vmem>>, vector<4x1xf32>
    %10 = vector.broadcast %5 : vector<4x1xf32> to vector<4x2xf32>
    %11 = arith.mulf %10, %6 : vector<4x2xf32>
    %cst_11 = arith.constant dense<0.000000e+00> : vector<2xf32>
    %12 = vector.multi_reduction <add>, %11, %cst_11 [0] : vector<4x2xf32> to vector<2xf32>
    %13 = vector.shape_cast %12 : vector<2xf32> to vector<1x2xf32>
    %14 = arith.addf %13, %7 : vector<1x2xf32>
    %cst_12 = arith.constant 0.000000e+00 : f32
    %15 = vector.broadcast %cst_12 : f32 to vector<1x2xf32>
    %16 = arith.maximumf %14, %15 : vector<1x2xf32>
    %17 = vector.broadcast %16 : vector<1x2xf32> to vector<4x2xf32>
    %18 = arith.mulf %17, %8 : vector<4x2xf32>
    %cst_13 = arith.constant dense<0.000000e+00> : vector<4xf32>
    %19 = vector.multi_reduction <add>, %18, %cst_13 [1] : vector<4x2xf32> to vector<4xf32>
    %20 = vector.shape_cast %19 : vector<4xf32> to vector<4x1xf32>
    %21 = arith.addf %20, %9 : vector<4x1xf32>
    %22 = arith.negf %21 : vector<4x1xf32>
    %23 = math.exp %22 : vector<4x1xf32>
    %cst_14 = arith.constant 1.000000e+00 : f32
    %24 = vector.broadcast %cst_14 : f32 to vector<4x1xf32>
    %25 = arith.addf %24, %23 : vector<4x1xf32>
    %26 = arith.divf %24, %25 : vector<4x1xf32>
    %27 = vector.broadcast %26 : vector<4x1xf32> to vector<4x256xf32>
    %28 = arith.mulf %1, %27 : vector<4x256xf32>
    %c0_15 = arith.constant 0 : index
    %c0_16 = arith.constant 0 : index
    %c0_17 = arith.constant 0 : index
    %29 = vector.load %arg6[%c0_15, %c0_16, %c0_17] : memref<1x4x256xf32, #tpu.memory_space<vmem>>, vector<1x4x256xf32>
    %30 = vector.shape_cast %29 : vector<1x4x256xf32> to vector<4x256xf32>
    %31 = vector.shape_cast %28 : vector<4x256xf32> to vector<1x4x256xf32>
    tpu.vector_store %arg6[%c0_15, %c0_16, %c0_17], %31 {strides = array<i32>} : memref<1x4x256xf32, #tpu.memory_space<vmem>>, vector<1x4x256xf32>,
    return
  }
  func.func @transform_0(%arg0: i32) -> (i32, i32, i32) {
    %c0_i32 = arith.constant 0 : i32
    %c0_i32_0 = arith.constant 0 : i32
    %c0_i32_1 = arith.constant 0 : i32
    return %arg0, %c0_i32, %c0_i32_0 : i32, i32, i32
  }
  func.func @transform_1(%arg0: i32) -> (i32, i32) {
    %c0_i32 = arith.constant 0 : i32
    %c0_i32_0 = arith.constant 0 : i32
    %c0_i32_1 = arith.constant 0 : i32
    return %c0_i32, %c0_i32_0 : i32, i32
  }
  func.func @transform_2(%arg0: i32) -> (i32, i32) {
    %c0_i32 = arith.constant 0 : i32
    %c0_i32_0 = arith.constant 0 : i32
    %c0_i32_1 = arith.constant 0 : i32
    return %c0_i32, %c0_i32_0 : i32, i32
  }
  func.func @transform_3(%arg0: i32) -> (i32, i32) {
    %c0_i32 = arith.constant 0 : i32
    %c0_i32_0 = arith.constant 0 : i32
    %c0_i32_1 = arith.constant 0 : i32
    return %c0_i32, %c0_i32_0 : i32, i32
  }
  func.func @transform_4(%arg0: i32) -> (i32, i32) {
    %c0_i32 = arith.constant 0 : i32
    %c0_i32_0 = arith.constant 0 : i32
    %c0_i32_1 = arith.constant 0 : i32
    return %c0_i32, %c0_i32_0 : i32, i32
  }
  func.func @transform_5(%arg0: i32) -> (i32, i32, i32) {
    %c0_i32 = arith.constant 0 : i32
    %c0_i32_0 = arith.constant 0 : i32
    %c0_i32_1 = arith.constant 0 : i32
    return %arg0, %c0_i32, %c0_i32_0 : i32, i32, i32
  }
}

</mosaic_0001>

<bundles_post_ra>
// kernel: tpu_custom_call.1
= control target key start
LH: loop header
LB: loop body
LE: loop exit
PB: predicated region body
PF: predicated region fallthrough
CT: control target
= control target key end

     0   :  { %10 = vsyncpa [#allocation3], 0  ;;  %s699_s0 = inlined_call_operand.vmem [shape: f32[2,4,256], index: 0, kind: input, shape index: {}]   ;;  %s700_s1 = inlined_call_operand.vmem [shape: f32[4,2], index: 1, kind: input, shape index: {}]   ;;  %s701_s2 = inlined_call_operand.hbm [shape: f32[1,2], index: 2, kind: input, shape index: {}]   ;;  %s702_s3 = inlined_call_operand.vmem [shape: f32[4,2], index: 3, kind: input, shape index: {}]   ;;  %s703_s4 = inlined_call_operand.vmem [shape: f32[4,1], index: 4, kind: input, shape index: {}]   ;;  %s704_s5 = inlined_call_operand.hbm [shape: f32[2,4,256], index: 5, kind: output, shape index: {}]  }
   0x1   :  { %11 = vsyncpa [#allocation4], 0 }
   0x2   :  { %13 = vsyncpa [#allocation4 + $0x1], 0  ;;  %s597_s18 = smov 0   ;;  %s599_s19 = smov 0  }
   0x3   :  { %s601_s20 = smov 0   ;;  %s603_s21 = smov 0  }
   0x4 LB: > { %s618_s22 = sadd.s32 4294967295, %s562_s21   ;;  %s391_s23 = sadd.s32 4294967294, %s562_s21   ;;  %s562_s21 = sphi %s603_s21, %s710_s21   ;;  %s558_s20 = sphi %s601_s20, %s709_s20   ;;  %s554_s19 = sphi %s599_s19, %s708_s19   ;;  %s550_s18 = sphi %s597_s18, %s707_s18  }
   0x5   : > { %s622_s24 = sadd.s32 1, %s562_s21   ;;  %s136_s25 = sadd.s32 1, %s558_s20 }
   0x6   : > { %s133_s26 = ssub.s32 %s562_s21, %s622_s24  ;;  %p146_p0 = scmp.ne.s32.totalorder %s558_s20, %s554_s19 }
   0x7   : > { %p134_p1 = scmp.eq.s32.totalorder %s133_s26, 0  ;;  %p147_p2 = scmp.eq.s32.totalorder %s618_s22, 1 }
   0x8   : > { %p152_p3 = scmp.ne.s32.totalorder %s554_s19, %s550_s18  ;;  %p153_p4 = scmp.eq.s32.totalorder %s391_s23, 1 }
   0x9   : > { %s633_s27 = scalar_select %p134_p1, %s558_s20, %s136_s25  }
   0xa   : > { %p635_p5 = por %p147_p2, %p146_p0  ;;  %p639_p6 = por %p153_p4, %p152_p3 }
   0xb   : > { %p392_p7 = scmp.ge.s32.totalorder %s562_s21, 1  ;;  %p160_p8 = scmp.lt.s32.totalorder %s562_s21, 3 }
   0xc   : > { %p422_p9 = scmp.eq.s32.totalorder %s618_s22, 0  ;;  %s175_s7 = sshll.u32 %s701_s2, 4  ;;  %s176_s7 = int_to_ptr.hbm [resolvable:$true] %s175_s7 }
   0xd   : > { %p161_p10 = pnand %p392_p7, %p160_p8  ;;  %s564_s8 = smov [#allocation2]  }
   0xe   : > { %s177_s9 = sshll.u32 %s564_s8, 4  ;;  %s178_s9 = int_to_ptr.vmem [resolvable:$true] %s177_s9 }
   0xf   : > { %p414_p11 = pneg %p161_p10  ;;  %204 = sbr.rel (%p161_p10) target bundleno = 449 (0x1c1), region = 40 }
  0x11   : > { %p415_p12 = pnand %p422_p9, %p414_p11 }
  0x13   : > { %417 = dma.hbm_to_vmem [thread:$0]  (!%p415_p12), %s176_s7, 16, %s178_s9, [#allocation3]  }
  0x14   : > { %541 = dma.done.wait (%p422_p9), [#allocation3], 16  }
  0x15   : > { %543 = vsyncadd (%p422_p9), [#allocation3], 4294967280  ;;  %p233_p13 = scmp.lt.s32.totalorder %s618_s22, 1  ;;  %vm245_vm0 = vcmask 1043456   ;;  %v252_v6 = vld [vmem:[%s700_s1] sm:$0xf] }
  0x16   : > { %vm257_vm1 = vcmask 11264   ;;  %v253_v16 = vld [vmem:[#allocation2] sm:$0x1]  ;;  %v254_v20 = vld [vmem:[%s702_s3] sm:$0xf]  ;;  %v565_v24 = vmov 0  }
  0x17   : > { %s234_s10 = scalar_select %p233_p13, %s618_s22, 1  ;;  %460 = vset.pattern.permute.xlu1 %v565_v24  ;;  %461 = vset.pattern.permute.xlu0 %v565_v24  ;;  %v255_v25 = vld [vmem:[%s703_s4] sm:$0xf]  ;;  %v566_v41 = vmov 839922192  }
  0x18   : > { %s230_s30 = sand.u32 1, %s554_s19   ;;  %v297_v42 = vunpack.c.l.s4 %v566_v41  ;;  %s407_s7 = sshll.u32 %s618_s22, 3 }
  0x19   : > { %s406_s11 = sshll.u32 %s234_s10, 3  ;;  %s397_s6 = sshll.u32 %s230_s30, 3 }
  0x1a   : > { %s237_s14 = scalar_lea.vmem %s699_s0, %s406_s11  ;;  %v298_v43 = vunpack.c.0.s8 %v297_v42  ;;  %s315_s10 = scalar_lea.hbm %s704_s5, %s407_s7 }
  0x1b   : > { %v654_v0 = vld [vmem:[%s237_s14] sm:$0xff]  ;;  %s232_s11 = scalar_lea.vmem [#allocation5], %s397_s6  ;;  %s319_s13 = sshll.u32 %s315_s10, 4  ;;  %s320_s13 = int_to_ptr.hbm [resolvable:$true] %s319_s13 }
  0x1c   : > { %240 = vst [vmem:[#allocation1] ss:$2 sm:$0xff] %v654_v0  ;;  %s317_s12 = sshll.u32 %s232_s11, 4  ;;  %s304_s14 = scalar_lea.sflag [#allocation4], %s230_s30  ;;  %s318_s12 = int_to_ptr.vmem [resolvable:$true] %s317_s12 }
  0x1d   : > { %s510_s15 = sshra.s32 %s320_s13, 4  ;;  %s516_s23 = scalar_lea.hbm %s704_s5, 16  ;;  %s511_s15 = int_to_ptr.hbm [resolvable:$true] %s510_s15 }
  0x1e   : > { %s512_s22 = scalar_lea.hbm %s511_s15, 8  ;;  %p517_p3 = scmp.lt.s32.totalorder %s511_s15, %s704_s5 }
  0x1f   : > { %p513_p0 = scmp.ne.s32.totalorder %s511_s15, %s512_s22  ;;  %p518_p4 = scmp.lt.s32.totalorder %s516_s23, %s512_s22 }
  0x21   : > { %p514_p1 = pnand %p513_p0, %p635_p5  ;;  %p519_p7 = por %p518_p4, %p517_p3 }
  0x23   : > { %v241_v1 = vld.sshfl [vmem:[#allocation1] sm:$0xff pattern:$0x75316420]  ;;  %v242_v2 = vld.sshfl [vmem:[#allocation1 + $0x8] sm:$0xff pattern:$0x75316420]  ;;  %p515_p2 = pneg %p514_p1 }
  0x24   : > { %v246_v3 = vsel %vm245_vm0, %v241_v1, 0.0  ;;  %v247_v4 = vsel %vm245_vm0, %v242_v2, 0.0 }
  0x25   : > { %v248_v5 = vadd.f32 %v247_v4, %v246_v3  ;;  %p520_p8 = pnand %p519_p7, %p515_p2 }
  0x27   : > { %249 = vadd.xlane.f32.xlu0 %v248_v5 }
  0x9a   : > { %v250_v7 = vpop.xlane.xlu0 %249 }
  0x9b   : > { %v251_v8 = vmul.f32 0.00390625, %v250_v7 }
  0x9d   : > { %v256_v9 = vmul.f32 %v252_v6, %v251_v8 }
  0x9f   : > { %v258_v10 = vsel %vm257_vm1, %v256_v9, 0.0 }
  0xa0   : > { %v259_v11 = vrot.slane %v258_v10, 4 }
  0xa2   : > { %v260_v12 = vadd.f32 %v259_v11, %v258_v10 }
  0xa4   : > { %v261_v13 = vrot.slane %v260_v12, 2 }
  0xa6   : > { %v262_v14 = vadd.f32 %v261_v13, %v260_v12 }
  0xa8   : > { %v263_v15 = vrot.slane %v262_v14, 1 }
  0xaa   : > { %v264_v17 = vadd.f32 %v263_v15, %v262_v14 }
  0xac   : > { %v265_v18 = vadd.f32 %v264_v17, %v253_v16 }
  0xae   : > { %v266_v19 = vmax.f32 %v265_v18, 0.0 }
  0xb0   : > { %v267_v21 = vperm.slane %v266_v19, 0 }
  0xb2   : > { %v268_v22 = vmul.f32 %v267_v21, %v254_v20 }
  0xb4   : > { %v269_v23 = vsel %vm257_vm1, %v268_v22, 0.0 }
  0xb5   : > { %270 = vadd.xlane.f32.xlu0 %v269_v23 }
 0x128   : > { %v271_v26 = vpop.xlane.xlu0 %270 }
 0x129   : > { %v272_v27 = vadd.f32 %v271_v26, %v255_v25 }
 0x12b   : > { %v400_v28 = vmul.f32 -1.442695, %v272_v27 }
 0x12d   : > { %462 = vpow2.f32 %v400_v28 }
 0x133   : > { %v463_v29 = vpop.eup %462 }
 0x134   : > { %v276_v30 = vadd.f32 1.0, %v463_v29 }
 0x136   : > { %464 = vrcp.f32 %v276_v30  ;;  %v288_v34 = vand.u32 2147483648, %v276_v30  ;;  %v286_v36 = vand.u32 2147483647, %v276_v30  ;;  %vm282_vm3 = vweird.f32 %v276_v30 }
 0x138   : > { %v289_v38 = vor.u32 1.1754944e-38, %v288_v34  ;;  %vm287_vm5 = vcmp.eq.f32.partialorder %v286_v36, 8.507059e+37 }
 0x13c   : > { %v465_v31 = vpop.eup %464 }
 0x13d   : > { %v278_v32 = vmul.f32 %v465_v31, %v276_v30  ;;  %vm283_vm2 = vweird.f32 %v465_v31 }
 0x13e   : > { %vm284_vm4 = vmor %vm282_vm3, %vm283_vm2 }
 0x13f   : > { %v279_v33 = vsub.f32 1.0, %v278_v32 }
 0x141   : > { %v280_v35 = vmul.f32 %v465_v31, %v279_v33 }
 0x143   : > { %v281_v37 = vadd.f32 %v465_v31, %v280_v35 }
 0x145   : > { %v285_v39 = vsel %vm284_vm4, %v465_v31, %v281_v37 }
 0x146   : > { %v290_v40 = vsel %vm287_vm5, %v289_v38, %v285_v39 }
 0x147   : > { %294 = vperm.xlu1 %460, %v290_v40  }
 0x1b9   : > { %v295_v44 = vpop.permute.xlu1 %294 }
 0x1ba   : > { %v299_v45 = vperm.slane %v295_v44, %v298_v43 }
 0x1bc   : > { %v301_v46 = vmul.f32 %v299_v45, %v654_v0 }
 0x1be   : > { %302 = vst [vmem:[%s232_s11] sm:$0xff] %v301_v46 }
 0x1bf   : > { %523 = shalt.err (!%p520_p8)
}
 0x1c0   : > { %412 = dma.vmem_to_hbm [thread:$0]  (%p635_p5), %s318_s12, 128, %s320_s13, %s304_s14  }
 0x1c1 PF: > { %p424_p9 = scmp.ge.s32.totalorder %s562_s21, 2  ;;  %s331_s30 = sand.u32 1, %s550_s18  }
 0x1c2   : > { %s332_s6 = scalar_lea.sflag [#allocation4], %s331_s30 }
 0x1c3   : > { %p419_p10 = pnand %p424_p9, %p639_p6 }
 0x1c5   : > { %p420_p11 = pneg %p419_p10 }
 0x1c7   : > { %545 = dma.done.wait (%p420_p11), %s332_s6, 128  }
 0x1c8   : > { %547 = vsyncadd (%p420_p11), %s332_s6, 4294967168  ;;  %p16_p12 = scmp.ge.s32.totalorder %s622_s24, 4   ;;  %s707_s18 = smov %s554_s19 }
 0x1c9   : > { %s708_s19 = smov %s558_s20  ;;  %s709_s20 = smov %s633_s27 }
 0x1ca   : > { %s710_s21 = smov %s622_s24  ;;  %18 = sbr.rel (!%p16_p12) target bundleno = 4 (0x4), region = 80 }
 0x1cf   :  { %338 = vsyncpa [#allocation3], 1 }
 0x1d0   :  { %340 = vsyncpa [#allocation3 + $0x1], 1 }
 0x1d1   :  { %341 = vsyncpa [#allocation4], 1 }
 0x1d2   :  { %343 = vsyncpa [#allocation4 + $0x1], 1 }

</bundles_post_ra>
